<compile_context>
chip_gen: v6e
topology: v6e:2x2x1
jax: 0.10.0
libtpu: 0.0.40
codegen_flags: <defaults>
</compile_context>

<pallas_src>
import math
import functools

import numpy as np
import jax
import jax.numpy as jnp
from jax.experimental import pallas as pl
from jax.experimental.pallas import tpu as pltpu

INPUT_DIM = 14                  # module default
D_MODEL = 3 * INPUT_DIM         # 42  (Encoder feature_size)
D_FF = 2048                     # nn.TransformerEncoderLayer default dim_feedforward
N_LAYERS = 2                    # module default N

# PositionalEncoder constants (match the reference indexing exactly:
#   pe[i]   = sin(t / 10000**(2*i    /d))   for even i
#   pe[i+1] = cos(t / 10000**(2*(i+1)/d))   i.e. each index j uses its own exponent)
_J = np.arange(D_MODEL, dtype=np.float64)
_PE_FREQ = (1.0 / 10000.0 ** (2.0 * _J / D_MODEL)).astype(np.float32).reshape(1, D_MODEL)
_PE_PHASE = np.where(_J % 2 == 0, 0.0, math.pi / 2.0).astype(np.float32).reshape(1, D_MODEL)

# dot_general dimension numbers: contract the LAST dim of both operands (A @ B^T).
_NT_DIMS = (((1,), (1,)), ((), ()))


def _detect_layers_per_step():
    """v7x: per-grid-step overhead (~0.35 us) exceeds the weight DMA a 2-step
    pipeline would hide at 3.2 TB/s -> flatten to one step with both layers.
    v5e (and roughly v6e): keep the 2-step pipelined grid."""
    try:
        kind = jax.devices()[0].device_kind.lower()
    except Exception:
        return 1
    if "v7" in kind or "7x" in kind:
        return N_LAYERS
    return 1


LAYERS_PER_STEP = _detect_layers_per_step()
GRID_STEPS = N_LAYERS // LAYERS_PER_STEP


def _layer_norm(v, w, b, eps):
    """torch.nn.LayerNorm (biased variance)."""
    mu = jnp.mean(v, axis=-1, keepdims=True)
    var = jnp.mean((v - mu) ** 2, axis=-1, keepdims=True)
    return (v - mu) * jax.lax.rsqrt(var + jnp.float32(eps)) * w + b


def encoder_kernel(xpe_ref, shared_ref, watt_ref, smalls_ref, w1_ref, b1_ref, w2_ref,
                   o_ref, x_sc, *, layers_per_step):
    g = pl.program_id(0)

    # x*sqrt(D) + pe is precomputed in the wrapper; just seed the carried activation.
    @pl.when(g == 0)
    def _():
        x_sc[...] = xpe_ref[...]

    for j in range(layers_per_step):
        x = x_sc[...]                                            # (1, D)
        sm = smalls_ref[j]                                       # (6, D) packed vectors:
        #  row 0: b_att   1: ln1w   2: ln1b   3: b2   4: ln2w   5: ln2b

        # ---- single-head self-attention, seq_len == 1 ----------------------
        # softmax over a single logit is exactly 1.0 => attention output == V;
        # the V projection and out_proj are folded host-side into watt/b_att.
        sa = jnp.dot(x, watt_ref[j], preferred_element_type=jnp.float32) + sm[0:1]
        x = _layer_norm(x + sa, sm[1:2], sm[2:3], 1e-5)

        # ---- feed-forward 42 -> 2048 -> 42 (ReLU, dropout = identity) -------
        # bf16 weights, f32 accumulation; w2 is lane-dense (D, F) => contract
        # over the last dim of both operands (no (F, D) lane-padded buffer).
        h = jnp.maximum(
            jnp.dot(x.astype(jnp.bfloat16), w1_ref[j],
                    preferred_element_type=jnp.float32) + b1_ref[j], 0.0)   # (1, F)
        ff = jax.lax.dot_general(
            h.astype(jnp.bfloat16), w2_ref[j], _NT_DIMS,
            preferred_element_type=jnp.float32) + sm[3:4]                   # (1, D)
        x = _layer_norm(x + ff, sm[4:5], sm[5:6], 1e-5)
        x_sc[...] = x

    # ---- custom Norm + out Linear, only after the last layer ----------------
    @pl.when(g == pl.num_programs(0) - 1)
    def _():
        x = x_sc[...]
        sh = shared_ref[...]                 # (4, D): alpha, beta, outw, outb (bcast)
        # Norm: alpha * (x - mean) / (unbiased std + eps) + bias, eps = 1e-6
        mu = jnp.mean(x, axis=-1, keepdims=True)
        var_u = jnp.sum((x - mu) ** 2, axis=-1, keepdims=True) / jnp.float32(D_MODEL - 1)
        xn = sh[0:1] * (x - mu) / (jnp.sqrt(var_u) + jnp.float32(1e-6)) + sh[1:2]
        # nn.Linear(42, 1): row-vector dot == multiply + lane reduce.
        o_ref[...] = jnp.sum(xn * sh[2:3], axis=-1, keepdims=True) + sh[3:4, 0:1]


def init_params(key):
    """Random parameters in a PyTorch-equivalent, already (in, out)-oriented layout.

    Mapping from the PyTorch module (done once, host-side):
      wv   = layer.self_attn.in_proj_weight[2D:3D, :].T   (only V is live; softmax
             over the single sequence position is exactly 1 => attn output == V)
      bv   = layer.self_attn.in_proj_bias[2D:3D]
      wo   = layer.self_attn.out_proj.weight.T ; bo = out_proj.bias
      w1   = layer.linear1.weight.T  (D, F)    ; b1 = linear1.bias
      w2   = layer.linear2.weight    (D, F)    ; b2 = linear2.bias   (already lane-dense)
      outw = out.weight.T (D, 1)               ; outb = out.bias
    """
    ks = jax.random.split(key, 10)

    def u(k, shape, scale=0.1):
        return jax.random.uniform(k, shape, jnp.float32, -scale, scale)

    L, D, F = N_LAYERS, D_MODEL, D_FF
    return {
        "wv":   u(ks[0], (L, D, D)),
        "bv":   u(ks[1], (L, 1, D)),
        "wo":   u(ks[2], (L, D, D)),
        "bo":   u(ks[3], (L, 1, D)),
        "ln1w": jnp.ones((L, 1, D), jnp.float32),
        "ln1b": jnp.zeros((L, 1, D), jnp.float32),
        "w1":   u(ks[4], (L, D, F), 0.05),
        "b1":   u(ks[5], (L, 1, F), 0.05),
        "w2":   u(ks[6], (L, D, F), 0.05),      # lane-dense == linear2.weight
        "b2":   u(ks[7], (L, 1, D), 0.05),
        "ln2w": jnp.ones((L, 1, D), jnp.float32),
        "ln2b": jnp.zeros((L, 1, D), jnp.float32),
        "alpha": jnp.ones((1, D), jnp.float32),                 # Norm.alpha
        "beta":  jnp.zeros((1, D), jnp.float32),                # Norm.bias
        "outw": u(ks[8], (D, 1)),                               # nn.Linear(42,1) weight^T
        "outb": u(ks[9], (1, 1)),
    }


def pack_params(p):
    """One-time host-side repack into the kernel's fused / packed / bf16 layout."""
    D = D_MODEL
    # Fold V projection + out_proj: (x @ wv + bv) @ wo + bo = x @ (wv@wo) + (bv@wo + bo).
    watt = jnp.einsum("lij,ljk->lik", p["wv"], p["wo"])                       # (L, D, D)
    batt = jnp.einsum("lij,ljk->lik", p["bv"], p["wo"]) + p["bo"]             # (L, 1, D)
    # Pack the six per-layer (1, D) vectors into one (L, 6, D) input (one DMA / layer).
    smalls = jnp.concatenate(
        [batt, p["ln1w"], p["ln1b"], p["b2"], p["ln2w"], p["ln2b"]], axis=1)  # (L, 6, D)
    # Pack the shared tail params (alpha, beta, outw, outb) into one (4, D) input.
    shared = jnp.concatenate(
        [p["alpha"], p["beta"], p["outw"].reshape(1, D),
         jnp.broadcast_to(p["outb"].reshape(1, 1), (1, D))], axis=0)          # (4, D)
    return {
        "watt":   watt.astype(jnp.float32),
        "smalls": smalls.astype(jnp.float32),
        "w1":     p["w1"].astype(jnp.bfloat16),     # (L, D, F) lane-dense, bf16
        "b1":     p["b1"].astype(jnp.float32),
        "w2":     p["w2"].astype(jnp.bfloat16),     # (L, D, F) lane-dense, bf16
        "shared": shared.astype(jnp.float32),
    }


def _shared_spec(shape):
    nd = len(shape)
    return pl.BlockSpec(shape, lambda g, _nd=nd: (0,) * _nd)


def _per_layer_spec(shape):
    nd = len(shape)
    return pl.BlockSpec((LAYERS_PER_STEP,) + shape,
                        lambda g, _nd=nd: (g,) + (0,) * _nd)


@jax.jit
def transformer_forward(x, t, packed):
    """Forward pass of `Transfomer`. x: any array with 42 elements, t: scalar."""
    D, F = D_MODEL, D_FF
    x42 = jnp.asarray(x, jnp.float32).reshape(1, D)
    t = jnp.asarray(t, jnp.float32)
    # PositionalEncoder folded into the wrapper: one (1, D) input instead of two.
    xpe = x42 * jnp.float32(math.sqrt(D)) + jnp.sin(
        t * jnp.asarray(_PE_FREQ) + jnp.asarray(_PE_PHASE))

    inputs = (
        xpe, packed["shared"],
        packed["watt"], packed["smalls"],
        packed["w1"], packed["b1"], packed["w2"],
    )
    in_specs = [
        _shared_spec((1, D)),          # xpe
        _shared_spec((4, D)),          # alpha / beta / outw / outb
        _per_layer_spec((D, D)),       # folded attention weight
        _per_layer_spec((6, D)),       # packed per-layer (1, D) vectors
        _per_layer_spec((D, F)),       # w1 (bf16, lane-dense)
        _per_layer_spec((1, F)),       # b1
        _per_layer_spec((D, F)),       # w2 (bf16, lane-dense)
    ]
    return pl.pallas_call(
        functools.partial(encoder_kernel, layers_per_step=LAYERS_PER_STEP),
        out_shape=jax.ShapeDtypeStruct((1, 1), jnp.float32),
        grid_spec=pltpu.PrefetchScalarGridSpec(
            num_scalar_prefetch=0,
            grid=(GRID_STEPS,),
            in_specs=in_specs,
            out_specs=pl.BlockSpec((1, 1), lambda g: (0, 0)),
            scratch_shapes=[pltpu.VMEM((1, D), jnp.float32)],
        ),
        compiler_params=pltpu.CompilerParams(
            dimension_semantics=("arbitrary",)),   # layers are sequential (carried x)
    )(*inputs)


# TODO(synk): the conv2d / channel-attention / LSTM / LSTM-attention branch of
# Transfomer.forward is dead code (its result is overwritten by
# `o = self.encoder(x, t)` before `self.out`), so it is intentionally omitted.
# TODO(synk): the module is inherently single-sample (reshape to (1,1,3,14));
# if multiple (x, t) pairs were ever evaluated, batch them to M rows and (on v7x)
# shard the batch axis across the two TensorCores.

if __name__ == "__main__":
    key = jax.random.PRNGKey(0)
    kx, kp = jax.random.split(key)
    # x is reshaped to (1, 1, 3, input_dim) inside the forward -> 42 elements.
    x = jax.random.normal(kx, (3, INPUT_DIM), jnp.float32)
    t = 5.0
    params = pack_params(init_params(kp))

    y = transformer_forward(x, t, params)
    y = jax.block_until_ready(y)
    assert y.shape == (1, 1) and y.dtype == jnp.float32
    print("KERNEL_OK")
</pallas_src>

<mosaic_0001>
module attributes {stable_mosaic.version = 11 : i64} {
  func.func @encoder_kernel(%arg0: i32, %arg1: memref<1x42xf32, #tpu.memory_space<vmem>>, %arg2: memref<4x42xf32, #tpu.memory_space<vmem>>, %arg3: memref<1x42x42xf32, #tpu.memory_space<vmem>>, %arg4: memref<1x6x42xf32, #tpu.memory_space<vmem>>, %arg5: memref<1x42x2048xbf16, #tpu.memory_space<vmem>>, %arg6: memref<1x1x2048xf32, #tpu.memory_space<vmem>>, %arg7: memref<1x42x2048xbf16, #tpu.memory_space<vmem>>, %arg8: memref<1x1xf32, #tpu.memory_space<vmem>>, %arg9: memref<1x42xf32, #tpu.memory_space<vmem>>) attributes {dimension_semantics = [#tpu.dimension_semantics<arbitrary>], iteration_bounds = array<i64: 2>, scalar_prefetch = 0 : i64, scratch_operands = 1 : i64, tpu.core_type = #tpu.core_type<tc>, window_params = [{pipeline_mode = #tpu.pipeline_mode<synchronous>, transform_indices = @transform_0, window_bounds = array<i64: 1, 42>}, {pipeline_mode = #tpu.pipeline_mode<synchronous>, transform_indices = @transform_1, window_bounds = array<i64: 4, 42>}, {transform_indices = @transform_2, window_bounds = array<i64: 1, 42, 42>}, {transform_indices = @transform_3, window_bounds = array<i64: 1, 6, 42>}, {transform_indices = @transform_4, window_bounds = array<i64: 1, 42, 2048>}, {transform_indices = @transform_5, window_bounds = array<i64: 1, 1, 2048>}, {transform_indices = @transform_6, window_bounds = array<i64: 1, 42, 2048>}, {pipeline_mode = #tpu.pipeline_mode<synchronous>, transform_indices = @transform_7, window_bounds = array<i64: 1, 1>}]} {
    %c0_i32 = arith.constant 0 : i32
    %0 = arith.cmpi eq, %arg0, %c0_i32 : i32
    %1 = arith.extui %0 : i1 to i32
    %c0_i32_0 = arith.constant 0 : i32
    %2 = arith.cmpi ne, %1, %c0_i32_0 : i32
    scf.if %2 {
      %c0_33 = arith.constant 0 : index
      %c0_34 = arith.constant 0 : index
      %76 = vector.load %arg1[%c0_33, %c0_34] : memref<1x42xf32, #tpu.memory_space<vmem>>, vector<1x42xf32>
      %c0_35 = arith.constant 0 : index
      %c0_36 = arith.constant 0 : index
      %77 = vector.load %arg9[%c0_35, %c0_36] : memref<1x42xf32, #tpu.memory_space<vmem>>, vector<1x42xf32>
      tpu.vector_store %arg9[%c0_35, %c0_36], %76 {strides = array<i32>} : memref<1x42xf32, #tpu.memory_space<vmem>>, vector<1x42xf32>,
    } else {
    }
    %c0 = arith.constant 0 : index
    %c0_1 = arith.constant 0 : index
    %3 = vector.load %arg9[%c0, %c0_1] : memref<1x42xf32, #tpu.memory_space<vmem>>, vector<1x42xf32>
    %c0_2 = arith.constant 0 : index
    %c0_3 = arith.constant 0 : index
    %c0_4 = arith.constant 0 : index
    %4 = vector.load %arg4[%c0_2, %c0_3, %c0_4] : memref<1x6x42xf32, #tpu.memory_space<vmem>>, vector<1x6x42xf32>
    %5 = vector.shape_cast %4 : vector<1x6x42xf32> to vector<6x42xf32>
    %c0_5 = arith.constant 0 : index
    %c0_6 = arith.constant 0 : index
    %c0_7 = arith.constant 0 : index
    %6 = vector.load %arg3[%c0_5, %c0_6, %c0_7] : memref<1x42x42xf32, #tpu.memory_space<vmem>>, vector<1x42x42xf32>
    %7 = vector.shape_cast %6 : vector<1x42x42xf32> to vector<42x42xf32>
    %cst = arith.constant dense<0.000000e+00> : vector<1x42xf32>
    %8 = tpu.matmul %3, %7, %cst {dimension_numbers = #tpu.dot_dimension_numbers<[1], [0], [0], [1], [0, 0, 1, 1], [], []>} : vector<1x42xf32>, vector<42x42xf32>, vector<1x42xf32> -> vector<1x42xf32>
    %9 = vector.extract_strided_slice %5 {offsets = [0, 0], sizes = [1, 42], strides = [1, 1]} : vector<6x42xf32> to vector<1x42xf32>
    %10 = arith.addf %8, %9 : vector<1x42xf32>
    %11 = arith.addf %3, %10 : vector<1x42xf32>
    %12 = vector.extract_strided_slice %5 {offsets = [1, 0], sizes = [1, 42], strides = [1, 1]} : vector<6x42xf32> to vector<1x42xf32>
    %13 = vector.extract_strided_slice %5 {offsets = [2, 0], sizes = [1, 42], strides = [1, 1]} : vector<6x42xf32> to vector<1x42xf32>
    %cst_8 = arith.constant dense<0.000000e+00> : vector<1xf32>
    %14 = vector.multi_reduction <add>, %11, %cst_8 [1] : vector<1x42xf32> to vector<1xf32>
    %15 = vector.shape_cast %14 : vector<1xf32> to vector<1x1xf32>
    %cst_9 = arith.constant 4.200000e+01 : f32
    %16 = vector.broadcast %cst_9 : f32 to vector<1x1xf32>
    %17 = arith.divf %15, %16 : vector<1x1xf32>
    %18 = vector.broadcast %17 : vector<1x1xf32> to vector<1x42xf32>
    %19 = arith.subf %11, %18 : vector<1x42xf32>
    %20 = arith.mulf %19, %19 : vector<1x42xf32>
    %cst_10 = arith.constant dense<0.000000e+00> : vector<1xf32>
    %21 = vector.multi_reduction <add>, %20, %cst_10 [1] : vector<1x42xf32> to vector<1xf32>
    %22 = vector.shape_cast %21 : vector<1xf32> to vector<1x1xf32>
    %cst_11 = arith.constant 4.200000e+01 : f32
    %23 = vector.broadcast %cst_11 : f32 to vector<1x1xf32>
    %24 = arith.divf %22, %23 : vector<1x1xf32>
    %25 = vector.broadcast %17 : vector<1x1xf32> to vector<1x42xf32>
    %26 = arith.subf %11, %25 : vector<1x42xf32>
    %cst_12 = arith.constant 9.99999974E-6 : f32
    %27 = vector.broadcast %cst_12 : f32 to vector<1x1xf32>
    %28 = arith.addf %24, %27 : vector<1x1xf32>
    %29 = math.rsqrt %28 : vector<1x1xf32>
    %30 = vector.broadcast %29 : vector<1x1xf32> to vector<1x42xf32>
    %31 = arith.mulf %26, %30 : vector<1x42xf32>
    %32 = arith.mulf %31, %12 : vector<1x42xf32>
    %33 = arith.addf %32, %13 : vector<1x42xf32>
    %34 = arith.truncf %33 : vector<1x42xf32> to vector<1x42xbf16>
    %c0_13 = arith.constant 0 : index
    %c0_14 = arith.constant 0 : index
    %c0_15 = arith.constant 0 : index
    %35 = vector.load %arg5[%c0_13, %c0_14, %c0_15] : memref<1x42x2048xbf16, #tpu.memory_space<vmem>>, vector<1x42x2048xbf16>
    %36 = vector.shape_cast %35 : vector<1x42x2048xbf16> to vector<42x2048xbf16>
    %cst_16 = arith.constant dense<0.000000e+00> : vector<1x2048xf32>
    %37 = tpu.matmul %34, %36, %cst_16 {dimension_numbers = #tpu.dot_dimension_numbers<[1], [0], [0], [1], [0, 0, 1, 1], [], []>} : vector<1x42xbf16>, vector<42x2048xbf16>, vector<1x2048xf32> -> vector<1x2048xf32>
    %c0_17 = arith.constant 0 : index
    %c0_18 = arith.constant 0 : index
    %c0_19 = arith.constant 0 : index
    %38 = vector.load %arg6[%c0_17, %c0_18, %c0_19] : memref<1x1x2048xf32, #tpu.memory_space<vmem>>, vector<1x1x2048xf32>
    %39 = vector.shape_cast %38 : vector<1x1x2048xf32> to vector<1x2048xf32>
    %40 = arith.addf %37, %39 : vector<1x2048xf32>
    %cst_20 = arith.constant 0.000000e+00 : f32
    %41 = vector.broadcast %cst_20 : f32 to vector<1x2048xf32>
    %42 = arith.maximumf %40, %41 : vector<1x2048xf32>
    %43 = arith.truncf %42 : vector<1x2048xf32> to vector<1x2048xbf16>
    %c0_21 = arith.constant 0 : index
    %c0_22 = arith.constant 0 : index
    %c0_23 = arith.constant 0 : index
    %44 = vector.load %arg7[%c0_21, %c0_22, %c0_23] : memref<1x42x2048xbf16, #tpu.memory_space<vmem>>, vector<1x42x2048xbf16>
    %45 = vector.shape_cast %44 : vector<1x42x2048xbf16> to vector<42x2048xbf16>
    %cst_24 = arith.constant dense<0.000000e+00> : vector<1x42xf32>
    %46 = tpu.matmul %43, %45, %cst_24 {dimension_numbers = #tpu.dot_dimension_numbers<[1], [1], [0], [0], [0, 0, 1, 0], [], []>} : vector<1x2048xbf16>, vector<42x2048xbf16>, vector<1x42xf32> -> vector<1x42xf32>
    %47 = vector.extract_strided_slice %5 {offsets = [3, 0], sizes = [1, 42], strides = [1, 1]} : vector<6x42xf32> to vector<1x42xf32>
    %48 = arith.addf %46, %47 : vector<1x42xf32>
    %49 = arith.addf %33, %48 : vector<1x42xf32>
    %50 = vector.extract_strided_slice %5 {offsets = [4, 0], sizes = [1, 42], strides = [1, 1]} : vector<6x42xf32> to vector<1x42xf32>
    %51 = vector.extract_strided_slice %5 {offsets = [5, 0], sizes = [1, 42], strides = [1, 1]} : vector<6x42xf32> to vector<1x42xf32>
    %cst_25 = arith.constant dense<0.000000e+00> : vector<1xf32>
    %52 = vector.multi_reduction <add>, %49, %cst_25 [1] : vector<1x42xf32> to vector<1xf32>
    %53 = vector.shape_cast %52 : vector<1xf32> to vector<1x1xf32>
    %cst_26 = arith.constant 4.200000e+01 : f32
    %54 = vector.broadcast %cst_26 : f32 to vector<1x1xf32>
    %55 = arith.divf %53, %54 : vector<1x1xf32>
    %56 = vector.broadcast %55 : vector<1x1xf32> to vector<1x42xf32>
    %57 = arith.subf %49, %56 : vector<1x42xf32>
    %58 = arith.mulf %57, %57 : vector<1x42xf32>
    %cst_27 = arith.constant dense<0.000000e+00> : vector<1xf32>
    %59 = vector.multi_reduction <add>, %58, %cst_27 [1] : vector<1x42xf32> to vector<1xf32>
    %60 = vector.shape_cast %59 : vector<1xf32> to vector<1x1xf32>
    %cst_28 = arith.constant 4.200000e+01 : f32
    %61 = vector.broadcast %cst_28 : f32 to vector<1x1xf32>
    %62 = arith.divf %60, %61 : vector<1x1xf32>
    %63 = vector.broadcast %55 : vector<1x1xf32> to vector<1x42xf32>
    %64 = arith.subf %49, %63 : vector<1x42xf32>
    %cst_29 = arith.constant 9.99999974E-6 : f32
    %65 = vector.broadcast %cst_29 : f32 to vector<1x1xf32>
    %66 = arith.addf %62, %65 : vector<1x1xf32>
    %67 = math.rsqrt %66 : vector<1x1xf32>
    %68 = vector.broadcast %67 : vector<1x1xf32> to vector<1x42xf32>
    %69 = arith.mulf %64, %68 : vector<1x42xf32>
    %70 = arith.mulf %69, %50 : vector<1x42xf32>
    %71 = arith.addf %70, %51 : vector<1x42xf32>
    %c0_30 = arith.constant 0 : index
    %c0_31 = arith.constant 0 : index
    %72 = vector.load %arg9[%c0_30, %c0_31] : memref<1x42xf32, #tpu.memory_space<vmem>>, vector<1x42xf32>
    tpu.vector_store %arg9[%c0_30, %c0_31], %71 {strides = array<i32>} : memref<1x42xf32, #tpu.memory_space<vmem>>, vector<1x42xf32>,
    %c1_i32 = arith.constant 1 : i32
    %73 = arith.cmpi eq, %arg0, %c1_i32 : i32
    %74 = arith.extui %73 : i1 to i32
    %c0_i32_32 = arith.constant 0 : i32
    %75 = arith.cmpi ne, %74, %c0_i32_32 : i32
    scf.if %75 {
      %c0_33 = arith.constant 0 : index
      %c0_34 = arith.constant 0 : index
      %76 = vector.load %arg9[%c0_33, %c0_34] : memref<1x42xf32, #tpu.memory_space<vmem>>, vector<1x42xf32>
      %c0_35 = arith.constant 0 : index
      %c0_36 = arith.constant 0 : index
      %77 = vector.load %arg2[%c0_35, %c0_36] : memref<4x42xf32, #tpu.memory_space<vmem>>, vector<4x42xf32>
      %cst_37 = arith.constant dense<0.000000e+00> : vector<1xf32>
      %78 = vector.multi_reduction <add>, %76, %cst_37 [1] : vector<1x42xf32> to vector<1xf32>
      %79 = vector.shape_cast %78 : vector<1xf32> to vector<1x1xf32>
      %cst_38 = arith.constant 4.200000e+01 : f32
      %80 = vector.broadcast %cst_38 : f32 to vector<1x1xf32>
      %81 = arith.divf %79, %80 : vector<1x1xf32>
      %82 = vector.broadcast %81 : vector<1x1xf32> to vector<1x42xf32>
      %83 = arith.subf %76, %82 : vector<1x42xf32>
      %84 = arith.mulf %83, %83 : vector<1x42xf32>
      %cst_39 = arith.constant dense<0.000000e+00> : vector<1xf32>
      %85 = vector.multi_reduction <add>, %84, %cst_39 [1] : vector<1x42xf32> to vector<1xf32>
      %86 = vector.shape_cast %85 : vector<1xf32> to vector<1x1xf32>
      %cst_40 = arith.constant 4.100000e+01 : f32
      %87 = vector.broadcast %cst_40 : f32 to vector<1x1xf32>
      %88 = arith.divf %86, %87 : vector<1x1xf32>
      %89 = vector.extract_strided_slice %77 {offsets = [0, 0], sizes = [1, 42], strides = [1, 1]} : vector<4x42xf32> to vector<1x42xf32>
      %90 = vector.broadcast %81 : vector<1x1xf32> to vector<1x42xf32>
      %91 = arith.subf %76, %90 : vector<1x42xf32>
      %92 = arith.mulf %89, %91 : vector<1x42xf32>
      %93 = math.sqrt %88 : vector<1x1xf32>
      %cst_41 = arith.constant 9.99999997E-7 : f32
      %94 = vector.broadcast %cst_41 : f32 to vector<1x1xf32>
      %95 = arith.addf %93, %94 : vector<1x1xf32>
      %96 = vector.broadcast %95 : vector<1x1xf32> to vector<1x42xf32>
      %97 = arith.divf %92, %96 : vector<1x42xf32>
      %98 = vector.extract_strided_slice %77 {offsets = [1, 0], sizes = [1, 42], strides = [1, 1]} : vector<4x42xf32> to vector<1x42xf32>
      %99 = arith.addf %97, %98 : vector<1x42xf32>
      %100 = vector.extract_strided_slice %77 {offsets = [2, 0], sizes = [1, 42], strides = [1, 1]} : vector<4x42xf32> to vector<1x42xf32>
      %101 = arith.mulf %99, %100 : vector<1x42xf32>
      %cst_42 = arith.constant dense<0.000000e+00> : vector<1xf32>
      %102 = vector.multi_reduction <add>, %101, %cst_42 [1] : vector<1x42xf32> to vector<1xf32>
      %103 = vector.shape_cast %102 : vector<1xf32> to vector<1x1xf32>
      %104 = vector.extract_strided_slice %77 {offsets = [3, 0], sizes = [1, 1], strides = [1, 1]} : vector<4x42xf32> to vector<1x1xf32>
      %105 = arith.addf %103, %104 : vector<1x1xf32>
      %c0_43 = arith.constant 0 : index
      %c0_44 = arith.constant 0 : index
      %106 = vector.load %arg8[%c0_43, %c0_44] : memref<1x1xf32, #tpu.memory_space<vmem>>, vector<1x1xf32>
      tpu.vector_store %arg8[%c0_43, %c0_44], %105 {strides = array<i32>} : memref<1x1xf32, #tpu.memory_space<vmem>>, vector<1x1xf32>,
    } else {
    }
    return
  }
  func.func @transform_0(%arg0: i32) -> (i32, i32) {
    %c0_i32 = arith.constant 0 : i32
    %c0_i32_0 = arith.constant 0 : i32
    %c0_i32_1 = arith.constant 0 : i32
    return %c0_i32, %c0_i32_0 : i32, i32
  }
  func.func @transform_1(%arg0: i32) -> (i32, i32) {
    %c0_i32 = arith.constant 0 : i32
    %c0_i32_0 = arith.constant 0 : i32
    %c0_i32_1 = arith.constant 0 : i32
    return %c0_i32, %c0_i32_0 : i32, i32
  }
  func.func @transform_2(%arg0: i32) -> (i32, i32, i32) {
    %c0_i32 = arith.constant 0 : i32
    %c0_i32_0 = arith.constant 0 : i32
    %c0_i32_1 = arith.constant 0 : i32
    return %arg0, %c0_i32, %c0_i32_0 : i32, i32, i32
  }
  func.func @transform_3(%arg0: i32) -> (i32, i32, i32) {
    %c0_i32 = arith.constant 0 : i32
    %c0_i32_0 = arith.constant 0 : i32
    %c0_i32_1 = arith.constant 0 : i32
    return %arg0, %c0_i32, %c0_i32_0 : i32, i32, i32
  }
  func.func @transform_4(%arg0: i32) -> (i32, i32, i32) {
    %c0_i32 = arith.constant 0 : i32
    %c0_i32_0 = arith.constant 0 : i32
    %c0_i32_1 = arith.constant 0 : i32
    return %arg0, %c0_i32, %c0_i32_0 : i32, i32, i32
  }
  func.func @transform_5(%arg0: i32) -> (i32, i32, i32) {
    %c0_i32 = arith.constant 0 : i32
    %c0_i32_0 = arith.constant 0 : i32
    %c0_i32_1 = arith.constant 0 : i32
    return %arg0, %c0_i32, %c0_i32_0 : i32, i32, i32
  }
  func.func @transform_6(%arg0: i32) -> (i32, i32, i32) {
    %c0_i32 = arith.constant 0 : i32
    %c0_i32_0 = arith.constant 0 : i32
    %c0_i32_1 = arith.constant 0 : i32
    return %arg0, %c0_i32, %c0_i32_0 : i32, i32, i32
  }
  func.func @transform_7(%arg0: i32) -> (i32, i32) {
    %c0_i32 = arith.constant 0 : i32
    %c0_i32_0 = arith.constant 0 : i32
    %c0_i32_1 = arith.constant 0 : i32
    return %c0_i32, %c0_i32_0 : i32, i32
  }
}

</mosaic_0001>

<bundles_post_ra>
// kernel: transformer_forward.1
= control target key start
LH: loop header
LB: loop body
LE: loop exit
PB: predicated region body
PF: predicated region fallthrough
CT: control target
= control target key end

     0   :  { %12 = vsyncpa [#allocation4], 0  ;;  %s2298_s24 = smov 0   ;;  %s2605_s0 = inlined_call_operand.vmem [shape: f32[1,42], index: 0, kind: input, shape index: {}]   ;;  %s2606_s1 = inlined_call_operand.vmem [shape: f32[4,42], index: 1, kind: input, shape index: {}]   ;;  %s2607_s2 = inlined_call_operand.vmem [shape: f32[2,42,42], index: 2, kind: input, shape index: {}]   ;;  %s2608_s3 = inlined_call_operand.vmem [shape: f32[2,6,42], index: 3, kind: input, shape index: {}]   ;;  %s2609_s4 = inlined_call_operand.vmem [shape: bf16[2,42,2048], index: 4, kind: input, shape index: {}]   ;;  %s2610_s5 = inlined_call_operand.vmem [shape: f32[2,1,2048], index: 5, kind: input, shape index: {}]   ;;  %s2611_s6 = inlined_call_operand.vmem [shape: bf16[2,42,2048], index: 6, kind: input, shape index: {}]   ;;  %s2612_s7 = inlined_call_operand.hbm [shape: f32[1,1], index: 7, kind: output, shape index: {}]  }
   0x1 LB: > { %s2304_s25 = sadd.s32 4294967295, %s2251_s24   ;;  %p2038_p0 = scmp.ge.s32.totalorder %s2251_s24, 1  ;;  %s2251_s24 = sphi %s2298_s24, %s18_s24  }
   0x2   : > { %p271_p1 = scmp.lt.s32.totalorder %s2251_s24, 3 }
   0x4   : > { %p272_p2 = pnand %p2038_p0, %p271_p1 }
   0x5   : > { %p316_p3 = scmp.lt.s32.totalorder (!%p272_p2), %s2304_s25, 1  ;;  %p2044_p4 = scmp.ne.s32.totalorder (!%p272_p2), %s2304_s25, 0 }
   0x6   : > { %275 = sbr.rel (%p272_p2) target bundleno = 1816 (0x718), region = 48 }
   0xb   : > { %s317_s26 = scalar_select %p316_p3, %s2304_s25, 1 }
   0xd   : > { %s2186_s27 = smul.u32 48, %s317_s26  ;;  %s2040_s28 = sshll.u32 %s317_s26, 3 }
   0xe   : > { %s2313_s8 = scalar_lea.vmem %s2608_s3, %s2040_s28  ;;  %s2187_s9 = smul.u32 384, %s317_s26 }
   0xf   : > { %s320_s12 = scalar_lea.vmem %s2607_s2, %s2186_s27  ;;  %s2042_s13 = sshll.u32 %s317_s26, 4 }
  0x10   : > { %s2321_s16 = scalar_lea.vmem %s2609_s4, %s2187_s9  ;;  %s2326_s19 = scalar_lea.vmem %s2610_s5, %s2042_s13 }
  0x11   : > { %s2331_s22 = scalar_lea.vmem %s2611_s6, %s2187_s9  ;;  %343 = sbr.rel (%p2044_p4) target bundleno = 24 (0x18), region = 52 }
  0x16   : > { %v344_v0 = vld [vmem:[%s2605_s0] sm:$0x1]  ;;  %vm345_vm0 = vcmask 335872  }
  0x17   : > { %346 = vst.msk [vmem:[#allocation2] sm:$0x1] %vm345_vm0, %v344_v0 }
  0x18 PF: > { %v354_v1 = vld [vmem:[%s320_s12 + $0x28] sm:$0x3]  ;;  %vm359_vm1 = vcmask 1041408   ;;  %v2253_v2 = vmov 0.0   ;;  %v353_v3 = vld [vmem:[%s320_s12 + $0x20] sm:$0xff]  ;;  %vm2254_vm2 = vmmov 0   ;;  %v453_v57 = vlaneseq }
  0x19   : > { %2171 = vmatprep.subr.mxu0 %v2253_v2  ;;  %2183 = vmatprep.mubr.msk.f32.mxu0 %vm2254_vm2, %v2253_v2  ;;  %v352_v4 = vld [vmem:[%s320_s12 + $0x18] sm:$0xff]  ;;  %v351_v5 = vld [vmem:[%s320_s12 + $0x10] sm:$0xff]  ;;  %v350_v6 = vld [vmem:[%s320_s12 + $0x8] sm:$0xff]  ;;  %vm355_vm3 = vcmask 343040   ;;  %vm434_vm4 = vcmask 335872   ;;  %vm837_vm5 = vcmask 1044480  }
  0x1a   : > { %2172 = vmatpush3.msk.msra.mxu0 %vm359_vm1, %v354_v1  ;;  %v349_v7 = vld [vmem:[%s320_s12] sm:$0xff]  ;;  %v511_v22 = vld [vmem:[%s2321_s16 + $0x108] sm:$0xff]  ;;  %v512_v46 = vld [vmem:[%s2321_s16 + $0x110] sm:$0xff]  ;;  %v2255_v54 = vmov 0   ;;  %v2256_v55 = vmov 1966171168  }
  0x1b   : > { %2173 = vmatprep.subr.mxu0 %v2253_v2  ;;  %v2339_v9 = vld [vmem:[%s2313_s8] sm:$0x3f]  ;;  %v519_v24 = vld [vmem:[%s2321_s16 + $0x148] sm:$0x11]  ;;  %v520_v47 = vld [vmem:[%s2321_s16 + $0x150] sm:$0x11]  ;;  %918 = vmatprep.mubr.bf16.mxu1 %v2255_v54  ;;  %v451_v56 = vunpack.c.l.s4 %v2256_v55 }
  0x1c   : > { %2174 = vmatpush3.msra.mxu0 %v353_v3  ;;  %v510_v20 = vld [vmem:[%s2321_s16 + $0x100] sm:$0xff]  ;;  %v2082_v26 = vcombine.high %v511_v22, %v519_v24  ;;  %v2081_v27 = vcombine.low %v511_v22, %v519_v24  ;;  %v495_v32 = vld [vmem:[%s2321_s16 + $0x88] sm:$0xff]  ;;  %v513_v48 = vld [vmem:[%s2321_s16 + $0x118] sm:$0xff]  ;;  %v2084_v49 = vcombine.high %v512_v46, %v520_v47  ;;  %v2083_v51 = vcombine.low %v512_v46, %v520_v47  ;;  %p2159_p5 = scmp.ne.s32.totalorder %s2304_s25, 1 }
  0x1d   : > { %2175 = vmatprep.subr.mxu0 %v2253_v2  ;;  %v518_v21 = vld [vmem:[%s2321_s16 + $0x140] sm:$0x11]  ;;  %v503_v34 = vld [vmem:[%s2321_s16 + $0xc8] sm:$0xff]  ;;  %v521_v50 = vld [vmem:[%s2321_s16 + $0x158] sm:$0x11]  ;;  %v452_v59 = vunpack.c.0.s8 %v451_v56  ;;  %v2372_v60 = vshrl.u32 %v453_v57, 7 }
  0x1e   : > { %2176 = vmatpush3.msra.mxu0 %v352_v4  ;;  %v347_v8 = vld [vmem:[#allocation2] sm:$0x1]  ;;  %v2080_v23 = vcombine.high %v510_v20, %v518_v21  ;;  %v2079_v25 = vcombine.low %v510_v20, %v518_v21  ;;  %v845_v29 = vsel %vm837_vm5, %v2081_v27, 0  ;;  %v2065_v35 = vcombine.low %v495_v32, %v503_v34  ;;  %v479_v40 = vld [vmem:[%s2321_s16 + $0x8] sm:$0xff]  ;;  %v488_v20 = vld [vmem:[%s2321_s16 + $0x50] sm:$0xff] }
  0x1f   : > { %2177 = vmatprep.subr.mxu0 %v2253_v2  ;;  %v494_v30 = vld [vmem:[%s2321_s16 + $0x80] sm:$0xff]  ;;  %v2066_v36 = vcombine.high %v495_v32, %v503_v34  ;;  %v487_v42 = vld [vmem:[%s2321_s16 + $0x48] sm:$0xff]  ;;  %v2086_v52 = vcombine.high %v513_v48, %v521_v50  ;;  %v2085_v53 = vcombine.low %v513_v48, %v521_v50  ;;  %v2375_v63 = vsub.s32 %v452_v59, %v2372_v60  ;;  %v481_v21 = vld [vmem:[%s2321_s16 + $0x18] sm:$0xff] }
  0x20   : > { %2178 = vmatpush3.msra.mxu0 %v351_v5  ;;  %2095 = vmatprep.subr.msk.bf16.mxu1 %vm837_vm5, %v2080_v23  ;;  %v839_v28 = vsel %vm837_vm5, %v2079_v25, 0  ;;  %v502_v31 = vld [vmem:[%s2321_s16 + $0xc0] sm:$0xff]  ;;  %v2049_v43 = vcombine.low %v479_v40, %v487_v42  ;;  %v2050_v44 = vcombine.high %v479_v40, %v487_v42  ;;  %v489_v22 = vld [vmem:[%s2321_s16 + $0x58] sm:$0xff]  ;;  %v507_v40 = vld [vmem:[%s2321_s16 + $0xe8] sm:$0xff] }
  0x21   : > { %2179 = vmatprep.subr.mxu0 %v2253_v2  ;;  %897 = vmatpush1.bf16.msra.mxu1 %v839_v28  ;;  %v2064_v33 = vcombine.high %v494_v30, %v502_v31  ;;  %v2063_v37 = vcombine.low %v494_v30, %v502_v31  ;;  %v478_v38 = vld [vmem:[%s2321_s16] sm:$0xff]  ;;  %v456_v0 = vrot.slane %v2339_v9, %v2375_v63  ;;  %v523_v30 = vld [vmem:[%s2321_s16 + $0x168] sm:$0x11]  ;;  %v524_v55 = vld [vmem:[%s2321_s16 + $0x170] sm:$0x11] }
  0x22   : > { %2180 = vmatpush3.msra.mxu0 %v350_v6  ;;  %v486_v39 = vld [vmem:[%s2321_s16 + $0x40] sm:$0xff]  ;;  %v2053_v32 = vcombine.low %v481_v21, %v489_v22  ;;  %v483_v47 = vld [vmem:[%s2321_s16 + $0x28] sm:$0xff]  ;;  %v517_v56 = vld [vmem:[%s2321_s16 + $0x138] sm:$0xff] }
  0x23   : > { %2181 = vmatprep.subr.mxu0 %v2253_v2  ;;  %898 = vmatprep.subr.bf16.mxu1 %v2064_v33  ;;  %v2048_v41 = vcombine.high %v478_v38, %v486_v39  ;;  %v2047_v45 = vcombine.low %v478_v38, %v486_v39  ;;  %v457_v1 = vcombine.high %v456_v0, %v456_v0  ;;  %v514_v27 = vld [vmem:[%s2321_s16 + $0x120] sm:$0xff]  ;;  %v499_v39 = vld [vmem:[%s2321_s16 + $0xa8] sm:$0xff]  ;;  %v525_v57 = vld [vmem:[%s2321_s16 + $0x178] sm:$0x11] }
  0x24   : > { %2182 = vmatpush3.msra.mxu0 %v349_v7  ;;  %v464_v2 = vrot.slane %v456_v0, %v2375_v63  ;;  %v522_v28 = vld [vmem:[%s2321_s16 + $0x160] sm:$0x11]  ;;  %v491_v48 = vld [vmem:[%s2321_s16 + $0x68] sm:$0xff]  ;;  %v2073_v50 = vcombine.low %v499_v39, %v507_v40 }
  0x25   : > { %2184 = vmatmul.mubr.msk.f32.vlgmr.msra.gmra.mxu0 %vm355_vm3, %v347_v8  ;;  %2097 = vmatprep.subr.msk.bf16.mxu0 %vm837_vm5, %v2082_v26  ;;  %v471_v3 = vrot.slane %v457_v1, %v2375_v63  ;;  %v2054_v26 = vcombine.high %v481_v21, %v489_v22  ;;  %v2088_v33 = vcombine.high %v514_v27, %v522_v28  ;;  %v506_v38 = vld [vmem:[%s2321_s16 + $0xe0] sm:$0xff] }
  0x26   : > { %938 = vmatpush1.bf16.msra.mxu0 %v845_v29  ;;  %899 = vmatpush1.bf16.msra.mxu1 %v2063_v37  ;;  %v474_v5 = vcombine.high %v464_v2, %v464_v2  ;;  %v515_v29 = vld [vmem:[%s2321_s16 + $0x128] sm:$0xff]  ;;  %v498_v37 = vld [vmem:[%s2321_s16 + $0xa0] sm:$0xff]  ;;  %v2057_v59 = vcombine.low %v483_v47, %v491_v48  ;;  %v2093_v1 = vcombine.low %v517_v56, %v525_v57  ;;  %v500_v2 = vld [vmem:[%s2321_s16 + $0xb0] sm:$0xff] }
  0x27   : > { %939 = vmatprep.subr.bf16.mxu0 %v2066_v36  ;;  %900 = vmatprep.subr.bf16.mxu1 %v2048_v41  ;;  %v2090_v34 = vcombine.high %v515_v29, %v523_v30  ;;  %v2089_v36 = vcombine.low %v515_v29, %v523_v30  ;;  %v490_v46 = vld [vmem:[%s2321_s16 + $0x60] sm:$0xff] }
  0x28   : > { %959 = vmatprep.mubr.bf16.mxu0 %v2255_v54  ;;  %v1278_v21 = vld [vmem:[%s2331_s22 + $0x100] sm:$0xff] }
  0x29   : > { %v869_v42 = vsel %vm837_vm5, %v2089_v36, 0  ;;  %v1286_v22 = vld [vmem:[%s2331_s22 + $0x140] sm:$0x11] }
  0x2a   : > { %940 = vmatpush1.bf16.msra.mxu0 %v2065_v35  ;;  %901 = vmatpush1.bf16.msra.mxu1 %v2047_v45  ;;  %v2087_v35 = vcombine.low %v514_v27, %v522_v28  ;;  %v482_v45 = vld [vmem:[%s2321_s16 + $0x20] sm:$0xff]  ;;  %v2144_v27 = vcombine.high %v1278_v21, %v1286_v22 }
  0x2b   : > { %941 = vmatprep.subr.bf16.mxu0 %v2050_v44  ;;  %2099 = vmatprep.subr.msk.bf16.mxu1 %vm837_vm5, %v2084_v49  ;;  %v2074_v44 = vcombine.high %v499_v39, %v507_v40  ;;  %v2071_v49 = vcombine.low %v498_v37, %v506_v38  ;;  %v1262_v29 = vld [vmem:[%s2331_s22 + $0x80] sm:$0xff]  ;;  %v1247_v40 = vld [vmem:[%s2331_s22 + $0x8] sm:$0xff] }
  0x2c   : > { %v863_v41 = vsel %vm837_vm5, %v2087_v35, 0  ;;  %v1270_v30 = vld [vmem:[%s2331_s22 + $0xc0] sm:$0xff] }
  0x2d   : > { %v2127_v36 = vcombine.low %v1262_v29, %v1270_v30  ;;  %v1254_v39 = vld [vmem:[%s2331_s22 + $0x40] sm:$0xff] }
  0x2e   : > { %942 = vmatpush1.bf16.msra.mxu0 %v2049_v43  ;;  %v2072_v43 = vcombine.high %v498_v37, %v506_v38  ;;  %v1246_v38 = vld [vmem:[%s2331_s22] sm:$0xff] }
  0x2f   : > { %2101 = vmatprep.subr.msk.bf16.mxu0 %vm837_vm5, %v2086_v52  ;;  %v2058_v52 = vcombine.high %v483_v47, %v491_v48  ;;  %v1281_v47 = vld [vmem:[%s2331_s22 + $0x118] sm:$0xff] }
  0xe5   : > { %v429_v10 = vpop.f32.mrf.mxu0 }
  0xe6   : > { %v430_v11 = vadd.f32 %v429_v10, %v2339_v9  ;;  %v504_v10 = vld [vmem:[%s2321_s16 + $0xd0] sm:$0xff] }
  0xe7   : > { %v2185_v12 = vpop.f32.mrf.mxu0 }
  0xe8   : > { %v433_v13 = vadd.f32 %v430_v11, %v347_v8  ;;  %v496_v8 = vld [vmem:[%s2321_s16 + $0x90] sm:$0xff]  ;;  %v497_v11 = vld [vmem:[%s2321_s16 + $0x98] sm:$0xff] }
  0xe9   : > { %v505_v12 = vld [vmem:[%s2321_s16 + $0xd8] sm:$0xff]  ;;  %v2067_v23 = vcombine.low %v496_v8, %v504_v10 }
  0xea   : > { %v435_v14 = vsel %vm434_vm4, %v433_v13, 0.0  ;;  %v2069_v24 = vcombine.low %v497_v11, %v505_v12 }
  0xeb   : > { %436 = vadd.xlane.f32.xlu0 %v435_v14  ;;  %v851_v14 = vsel %vm837_vm5, %v2083_v51, 0  ;;  %v2056_v51 = vcombine.high %v482_v45, %v490_v46 }
 0x174   : > { %v437_v15 = vpop.xlane.xlu0 %436 }
 0x175   : > { %v439_v16 = vmul.f32 0.023809524, %v437_v15 }
 0x177   : > { %v2343_v17 = vsub.f32 %v433_v13, %v439_v16  ;;  %v857_v16 = vsel %vm837_vm5, %v2085_v53, 0  ;;  %v516_v53 = vld [vmem:[%s2321_s16 + $0x130] sm:$0xff] }
 0x178   : > { %v2091_v0 = vcombine.low %v516_v53, %v524_v55 }
 0x179   : > { %v441_v18 = vmul.f32 %v2343_v17, %v2343_v17 }
 0x17b   : > { %v442_v19 = vsel %vm434_vm4, %v441_v18, 0.0  ;;  %v2068_v18 = vcombine.high %v496_v8, %v504_v10 }
 0x17c   : > { %443 = vadd.xlane.f32.xlu0 %v442_v19  ;;  %v2070_v19 = vcombine.high %v497_v11, %v505_v12  ;;  %v484_v11 = vld [vmem:[%s2321_s16 + $0x30] sm:$0xff] }
 0x17d   : > { %v492_v12 = vld [vmem:[%s2321_s16 + $0x70] sm:$0xff] }
 0x205   : > { %v444_v58 = vpop.xlane.xlu0 %443 }
 0x206   : > { %v445_v61 = vmul.f32 0.023809524, %v444_v58  ;;  %v2055_v58 = vcombine.low %v482_v45, %v490_v46  ;;  %v1280_v45 = vld [vmem:[%s2331_s22 + $0x110] sm:$0xff] }
 0x207   : > { %v1288_v46 = vld [vmem:[%s2331_s22 + $0x150] sm:$0x11] }
 0x208   : > { %v446_v62 = vadd.f32 1e-05, %v445_v61  ;;  %v2092_v61 = vcombine.high %v516_v53, %v524_v55  ;;  %v2148_v48 = vcombine.high %v1280_v45, %v1288_v46  ;;  %v756_v53 = vsub.s32 0, %v2372_v60 }
 0x209   : > { %v764_v55 = vsub.s32 2, %v2372_v60 }
 0x20a   : > { %2208 = vrsqrt.f32 %v446_v62  ;;  %v2094_v62 = vcombine.high %v517_v56, %v525_v57  ;;  %v2471_v56 = vld [vmem:[%s2326_s19] sm:$0xff]  ;;  %v760_v57 = vsub.s32 1, %v2372_v60 }
 0x217   : > { %v2209_v4 = vpop.eup %2208 }
 0x218   : > { %v448_v6 = vmul.f32 %v2209_v4, %v2343_v17  ;;  %v480_v17 = vld [vmem:[%s2321_s16 + $0x10] sm:$0xff]  ;;  %v501_v4 = vld [vmem:[%s2321_s16 + $0xb8] sm:$0xff] }
 0x219   : > { %v2052_v25 = vcombine.high %v480_v17, %v488_v20  ;;  %v2051_v31 = vcombine.low %v480_v17, %v488_v20  ;;  %v2060_v17 = vcombine.high %v484_v11, %v492_v12 }
 0x21a   : > { %v473_v7 = vmul.f32 %v471_v3, %v448_v6  ;;  %v508_v3 = vld [vmem:[%s2321_s16 + $0xf0] sm:$0xff]  ;;  %v875_v6 = vsel %vm837_vm5, %v2091_v0, 0 }
 0x21b   : > { %v2076_v8 = vcombine.high %v500_v2, %v508_v3 }
 0x21c   : > { %v2386_v13 = vadd.f32 %v474_v5, %v473_v7  ;;  %v509_v5 = vld [vmem:[%s2321_s16 + $0xf8] sm:$0xff]  ;;  %v881_v7 = vsel %vm837_vm5, %v2093_v1, 0 }
 0x21d   : > { %v2078_v10 = vcombine.high %v501_v4, %v509_v5 }
 0x21e   : > { %v2391_v15 = vpack.c.bf16 %v2386_v13, %v2386_v13 }
 0x220   : > { %2096 = vmatmul.mubr.msk.bf16.vlgmr.msra.gmra.mxu1 %vm355_vm3, %v2391_v15  ;;  %2098 = vmatmul.mubr.msk.bf16.vlgmr.msra.gmra.mxu0 %vm355_vm3, %v2391_v15 }
 0x221   : > { %979 = vmatpush1.bf16.msra.mxu1 %v851_v14  ;;  %1020 = vmatpush1.bf16.msra.mxu0 %v857_v16  ;;  %v485_v14 = vld [vmem:[%s2321_s16 + $0x38] sm:$0xff] }
 0x222   : > { %980 = vmatprep.subr.bf16.mxu1 %v2068_v18  ;;  %1021 = vmatprep.subr.bf16.mxu0 %v2070_v19  ;;  %v493_v16 = vld [vmem:[%s2321_s16 + $0x78] sm:$0xff]  ;;  %v2075_v18 = vcombine.low %v500_v2, %v508_v3  ;;  %v2077_v19 = vcombine.low %v501_v4, %v509_v5 }
 0x223   : > { %1000 = vmatprep.mubr.bf16.mxu1 %v2255_v54  ;;  %1041 = vmatprep.mubr.bf16.mxu0 %v2255_v54  ;;  %v2062_v20 = vcombine.high %v485_v14, %v493_v16 }
 0x225   : > { %981 = vmatpush1.bf16.msra.mxu1 %v2067_v23  ;;  %1022 = vmatpush1.bf16.msra.mxu0 %v2069_v24  ;;  %v1279_v23 = vld [vmem:[%s2331_s22 + $0x108] sm:$0xff] }
 0x226   : > { %982 = vmatprep.subr.bf16.mxu1 %v2052_v25  ;;  %1023 = vmatprep.subr.bf16.mxu0 %v2054_v26  ;;  %v1287_v24 = vld [vmem:[%s2331_s22 + $0x148] sm:$0x11]  ;;  %v2059_v25 = vcombine.low %v484_v11, %v492_v12  ;;  %v2061_v26 = vcombine.low %v485_v14, %v493_v16  ;;  %v1264_v16 = vld [vmem:[%s2331_s22 + $0x90] sm:$0xff] }
 0x227   : > { %v2146_v28 = vcombine.high %v1279_v23, %v1287_v24 }
 0x229   : > { %983 = vmatpush1.bf16.msra.mxu1 %v2051_v31  ;;  %1024 = vmatpush1.bf16.msra.mxu0 %v2053_v32  ;;  %v1263_v31 = vld [vmem:[%s2331_s22 + $0x88] sm:$0xff] }
 0x22a   : > { %2103 = vmatprep.subr.msk.bf16.mxu1 %vm837_vm5, %v2088_v33  ;;  %2105 = vmatprep.subr.msk.bf16.mxu0 %vm837_vm5, %v2090_v34  ;;  %v1271_v32 = vld [vmem:[%s2331_s22 + $0xc8] sm:$0xff]  ;;  %v2143_v33 = vcombine.low %v1278_v21, %v1286_v22  ;;  %v2128_v34 = vcombine.high %v1262_v29, %v1270_v30  ;;  %v1273_v21 = vld [vmem:[%s2331_s22 + $0xd8] sm:$0xff] }
 0x22b   : > { %v2130_v35 = vcombine.high %v1263_v31, %v1271_v32  ;;  %v2129_v37 = vcombine.low %v1263_v31, %v1271_v32 }
 0x22c   : > { %2100 = vmatmul.mubr.msk.bf16.vlgmr.msra.gmra.mxu1 %vm355_vm3, %v2391_v15  ;;  %2102 = vmatmul.mubr.msk.bf16.vlgmr.msra.gmra.mxu0 %vm355_vm3, %v2391_v15 }
 0x22d   : > { %1061 = vmatpush1.bf16.msra.mxu1 %v863_v41  ;;  %1102 = vmatpush1.bf16.msra.mxu0 %v869_v42  ;;  %v2112_v41 = vcombine.high %v1246_v38, %v1254_v39  ;;  %v1255_v42 = vld [vmem:[%s2331_s22 + $0x48] sm:$0xff] }
 0x22e   : > { %1062 = vmatprep.subr.bf16.mxu1 %v2072_v43  ;;  %1103 = vmatprep.subr.bf16.mxu0 %v2074_v44  ;;  %v2111_v43 = vcombine.low %v1246_v38, %v1254_v39  ;;  %v2113_v44 = vcombine.low %v1247_v40, %v1255_v42  ;;  %v1257_v38 = vld [vmem:[%s2331_s22 + $0x58] sm:$0xff] }
 0x22f   : > { %1082 = vmatprep.mubr.bf16.mxu1 %v2255_v54  ;;  %1123 = vmatprep.mubr.bf16.mxu0 %v2255_v54 }
 0x231   : > { %1063 = vmatpush1.bf16.msra.mxu1 %v2071_v49  ;;  %1104 = vmatpush1.bf16.msra.mxu0 %v2073_v50  ;;  %v1289_v49 = vld [vmem:[%s2331_s22 + $0x158] sm:$0x11]  ;;  %v2147_v50 = vcombine.low %v1280_v45, %v1288_v46  ;;  %v780_v45 = vsub.s32 6, %v2372_v60 }
 0x232   : > { %1064 = vmatprep.subr.bf16.mxu1 %v2056_v51  ;;  %1105 = vmatprep.subr.bf16.mxu0 %v2058_v52  ;;  %v2149_v51 = vcombine.low %v1281_v47, %v1289_v49  ;;  %v2150_v52 = vcombine.high %v1281_v47, %v1289_v49 }
 0x235   : > { %1065 = vmatpush1.bf16.msra.mxu1 %v2055_v58  ;;  %1106 = vmatpush1.bf16.msra.mxu0 %v2057_v59  ;;  %v768_v58 = vsub.s32 3, %v2372_v60  ;;  %v757_v59 = vrot.slane %v2471_v56, %v756_v53 }
 0x236   : > { %2107 = vmatprep.subr.msk.bf16.mxu1 %vm837_vm5, %v2092_v61  ;;  %2109 = vmatprep.subr.msk.bf16.mxu0 %vm837_vm5, %v2094_v62  ;;  %v765_v61 = vrot.slane %v2471_v56, %v764_v55  ;;  %v761_v62 = vrot.slane %v2471_v56, %v760_v57 }
 0x237   : > { %v769_v0 = vrot.slane %v2471_v56, %v768_v58 }
 0x238   : > { %2104 = vmatmul.mubr.msk.bf16.vlgmr.msra.gmra.mxu1 %vm355_vm3, %v2391_v15  ;;  %2106 = vmatmul.mubr.msk.bf16.vlgmr.msra.gmra.mxu0 %vm355_vm3, %v2391_v15 }
 0x239   : > { %1143 = vmatpush1.bf16.msra.mxu1 %v875_v6  ;;  %1184 = vmatpush1.bf16.msra.mxu0 %v881_v7 }
 0x23a   : > { %1144 = vmatprep.subr.bf16.mxu1 %v2076_v8  ;;  %1185 = vmatprep.subr.bf16.mxu0 %v2078_v10 }
 0x23b   : > { %1164 = vmatprep.mubr.bf16.mxu1 %v2255_v54  ;;  %1205 = vmatprep.mubr.bf16.mxu0 %v2255_v54  ;;  %v2145_v54 = vcombine.low %v1279_v23, %v1287_v24 }
 0x23d   : > { %1145 = vmatpush1.bf16.msra.mxu1 %v2075_v18  ;;  %1186 = vmatpush1.bf16.msra.mxu0 %v2077_v19 }
 0x23e   : > { %1146 = vmatprep.subr.bf16.mxu1 %v2060_v17  ;;  %1187 = vmatprep.subr.bf16.mxu0 %v2062_v20  ;;  %v1272_v17 = vld [vmem:[%s2331_s22 + $0xd0] sm:$0xff]  ;;  %v1265_v20 = vld [vmem:[%s2331_s22 + $0x98] sm:$0xff] }
 0x23f   : > { %v2132_v30 = vcombine.high %v1264_v16, %v1272_v17  ;;  %v2134_v31 = vcombine.high %v1265_v20, %v1273_v21 }
 0x241   : > { %1147 = vmatpush1.bf16.msra.mxu1 %v2059_v25  ;;  %1188 = vmatpush1.bf16.msra.mxu0 %v2061_v26  ;;  %v776_v26 = vsub.s32 5, %v2372_v60 }
 0x242   : > { %1546 = vmatprep.subr.bf16.mxu1 %v2144_v27  ;;  %1586 = vmatprep.subr.bf16.mxu0 %v2146_v28  ;;  %v784_v27 = vsub.s32 7, %v2372_v60 }
 0x243   : > { %v777_v32 = vrot.slane %v2471_v56, %v776_v26 }
 0x244   : > { %2108 = vmatmul.mubr.msk.bf16.vlgmr.msra.gmra.mxu1 %vm355_vm3, %v2391_v15  ;;  %2110 = vmatmul.mubr.msk.bf16.vlgmr.msra.gmra.mxu0 %vm355_vm3, %v2391_v15  ;;  %v2114_v15 = vcombine.high %v1247_v40, %v1255_v42 }
 0x245   : > { %1547 = vmatpush1.bf16.xpose.msra.mxu1 %v2143_v33  ;;  %1587 = vmatpush1.bf16.xpose.msra.mxu0 %v2145_v54  ;;  %v785_v33 = vrot.slane %v2471_v56, %v784_v27 }
 0x246   : > { %1548 = vmatprep.subr.bf16.mxu1 %v2128_v34  ;;  %1588 = vmatprep.subr.bf16.mxu0 %v2130_v35  ;;  %v1248_v35 = vld [vmem:[%s2331_s22 + $0x10] sm:$0xff] }
 0x24d   : > { %1549 = vmatpush1.bf16.xpose.msra.mxu1 %v2127_v36  ;;  %1589 = vmatpush1.bf16.xpose.msra.mxu0 %v2129_v37  ;;  %v1256_v36 = vld [vmem:[%s2331_s22 + $0x50] sm:$0xff]  ;;  %v1249_v37 = vld [vmem:[%s2331_s22 + $0x18] sm:$0xff] }
 0x24e   : > { %1550 = vmatprep.subr.bf16.mxu1 %v2112_v41  ;;  %1590 = vmatprep.subr.bf16.mxu0 %v2114_v15  ;;  %v772_v15 = vsub.s32 4, %v2372_v60  ;;  %v2118_v49 = vcombine.high %v1249_v37, %v1257_v38 }
 0x255   : > { %1551 = vmatpush1.bf16.xpose.msra.mxu1 %v2111_v43  ;;  %1591 = vmatpush1.bf16.xpose.msra.mxu0 %v2113_v44  ;;  %v2131_v43 = vcombine.low %v1264_v16, %v1272_v17  ;;  %v2133_v44 = vcombine.low %v1265_v20, %v1273_v21 }
 0x256   : > { %1626 = vmatprep.subr.bf16.mxu1 %v2148_v48  ;;  %1666 = vmatprep.subr.bf16.mxu0 %v2150_v52  ;;  %v2116_v48 = vcombine.high %v1248_v35, %v1256_v36 }
 0x2e0   : > { %v920_v1 = vpop.f32.mrf.mxu1  ;;  %v961_v2 = vpop.f32.mrf.mxu0 }
 0x2e1   : > { %v921_v3 = vadd.f32 %v920_v1, %v757_v59  ;;  %v962_v4 = vadd.f32 %v961_v2, %v765_v61  ;;  %v781_v1 = vrot.slane %v2471_v56, %v780_v45  ;;  %v1282_v2 = vld [vmem:[%s2331_s22 + $0x120] sm:$0xff] }
 0x2e2   : > { %v922_v5 = vpop.f32.mrf.mxu1  ;;  %v963_v6 = vpop.f32.mrf.mxu0 }
 0x2e3   : > { %v923_v7 = vadd.f32 %v922_v5, %v761_v62  ;;  %v964_v8 = vadd.f32 %v963_v6, %v769_v0  ;;  %v1214_v10 = vmax.f32 %v921_v3, 0.0  ;;  %v1216_v11 = vmax.f32 %v962_v4, 0.0  ;;  %v1290_v3 = vld [vmem:[%s2331_s22 + $0x160] sm:$0x11]  ;;  %v1283_v4 = vld [vmem:[%s2331_s22 + $0x128] sm:$0xff] }
 0x2e4   : > { %v924_v12 = vpop.f32.mrf.mxu1  ;;  %v965_v14 = vpop.f32.mrf.mxu0  ;;  %v773_v0 = vrot.slane %v2471_v56, %v772_v15  ;;  %v1291_v5 = vld [vmem:[%s2331_s22 + $0x168] sm:$0x11]  ;;  %v2117_v56 = vcombine.low %v1249_v37, %v1257_v38 }
 0x2e5   : > { %v1215_v18 = vmax.f32 %v923_v7, 0.0  ;;  %v1217_v19 = vmax.f32 %v964_v8, 0.0  ;;  %v1230_v28 = vpack.c.bf16 %v1214_v10, %v1214_v10  ;;  %v1232_v29 = vpack.c.bf16 %v1216_v11, %v1216_v11  ;;  %v2516_v6 = vld [vmem:[%s2326_s19 + $0x8] sm:$0xff] }
 0x2e6   : > { %v925_v22 = vpop.f32.mrf.mxu1  ;;  %v966_v23 = vpop.f32.mrf.mxu0  ;;  %v793_v7 = vrot.slane %v2516_v6, %v760_v57  ;;  %v801_v8 = vrot.slane %v2516_v6, %v768_v58  ;;  %v2115_v10 = vcombine.low %v1248_v35, %v1256_v36  ;;  %v2153_v37 = vcombine.low %v1283_v4, %v1291_v5 }
 0x2e7   : > { %v1231_v24 = vpack.c.bf16 %v1215_v18, %v1215_v18  ;;  %v1233_v25 = vpack.c.bf16 %v1217_v19, %v1217_v19  ;;  %v2152_v18 = vcombine.high %v1282_v2, %v1290_v3  ;;  %v2154_v19 = vcombine.high %v1283_v4, %v1291_v5  ;;  %v1284_v5 = vld [vmem:[%s2331_s22 + $0x130] sm:$0xff] }
 0x2e8   : > { %v797_v4 = vrot.slane %v2516_v6, %v764_v55 }
 0x2e9   : > { %1568 = vmatprep.mubr.bf16.mxu1 %v1231_v24  ;;  %1608 = vmatprep.mubr.bf16.mxu0 %v1233_v25 }
 0x2ea   : > { %1569 = vmatmul.mubr.bf16.vlgmr.msra.gmra.mxu1 %v1230_v28  ;;  %1609 = vmatmul.mubr.bf16.vlgmr.msra.gmra.mxu0 %v1232_v29  ;;  %v1266_v28 = vld [vmem:[%s2331_s22 + $0xa0] sm:$0xff] }
 0x2eb   : > { %1627 = vmatpush1.bf16.xpose.msra.mxu1 %v2147_v50  ;;  %1667 = vmatpush1.bf16.xpose.msra.mxu0 %v2149_v51 }
 0x2ec   : > { %v1002_v54 = vpop.f32.mrf.mxu1  ;;  %v1043_v34 = vpop.f32.mrf.mxu0  ;;  %1628 = vmatprep.subr.bf16.mxu1 %v2132_v30  ;;  %1668 = vmatprep.subr.bf16.mxu0 %v2134_v31 }
 0x2ed   : > { %v1003_v11 = vadd.f32 %v1002_v54, %v773_v0  ;;  %v1044_v12 = vadd.f32 %v1043_v34, %v781_v1  ;;  %v1275_v54 = vld [vmem:[%s2331_s22 + $0xe8] sm:$0xff]  ;;  %v2151_v34 = vcombine.low %v1282_v2, %v1290_v3  ;;  %v789_v3 = vrot.slane %v2516_v6, %v756_v53 }
 0x2ee   : > { %v1004_v39 = vpop.f32.mrf.mxu1  ;;  %v1045_v40 = vpop.f32.mrf.mxu0 }
 0x2ef   : > { %v1005_v41 = vadd.f32 %v1004_v39, %v777_v32  ;;  %v1046_v42 = vadd.f32 %v1045_v40, %v785_v33  ;;  %v1218_v58 = vmax.f32 %v1003_v11, 0.0  ;;  %v1220_v22 = vmax.f32 %v1044_v12, 0.0  ;;  %v1274_v32 = vld [vmem:[%s2331_s22 + $0xe0] sm:$0xff]  ;;  %v1267_v33 = vld [vmem:[%s2331_s22 + $0xa8] sm:$0xff] }
 0x2f0   : > { %v1006_v46 = vpop.f32.mrf.mxu1  ;;  %v1047_v47 = vpop.f32.mrf.mxu0  ;;  %v2136_v39 = vcombine.high %v1266_v28, %v1274_v32  ;;  %v2138_v40 = vcombine.high %v1267_v33, %v1275_v54  ;;  %v817_v11 = vrot.slane %v2516_v6, %v784_v27 }
 0x2f1   : > { %v1219_v50 = vmax.f32 %v1005_v41, 0.0  ;;  %v1221_v51 = vmax.f32 %v1046_v42, 0.0  ;;  %v1234_v35 = vpack.c.bf16 %v1218_v58, %v1218_v58  ;;  %v1236_v36 = vpack.c.bf16 %v1220_v22, %v1220_v22  ;;  %v1258_v46 = vld [vmem:[%s2331_s22 + $0x60] sm:$0xff]  ;;  %v1268_v58 = vld [vmem:[%s2331_s22 + $0xb0] sm:$0xff] }
 0x2f2   : > { %v1007_v52 = vpop.f32.mrf.mxu1  ;;  %v1048_v59 = vpop.f32.mrf.mxu0  ;;  %v1276_v22 = vld [vmem:[%s2331_s22 + $0xf0] sm:$0xff] }
 0x2f3   : > { %v1235_v61 = vpack.c.bf16 %v1219_v50, %v1219_v50  ;;  %v1237_v62 = vpack.c.bf16 %v1221_v51, %v1221_v51  ;;  %1629 = vmatpush1.bf16.xpose.msra.mxu1 %v2131_v43  ;;  %1669 = vmatpush1.bf16.xpose.msra.mxu0 %v2133_v44  ;;  %v1250_v44 = vld [vmem:[%s2331_s22 + $0x20] sm:$0xff]  ;;  %v1259_v50 = vld [vmem:[%s2331_s22 + $0x68] sm:$0xff]  ;;  %v2135_v51 = vcombine.low %v1266_v28, %v1274_v32 }
 0x2f4   : > { %1630 = vmatprep.subr.bf16.mxu1 %v2116_v48  ;;  %1670 = vmatprep.subr.bf16.mxu0 %v2118_v49  ;;  %v1251_v49 = vld [vmem:[%s2331_s22 + $0x28] sm:$0xff]  ;;  %v2119_v53 = vcombine.low %v1250_v44, %v1258_v46 }
 0x2f5   : > { %1648 = vmatprep.mubr.bf16.mxu1 %v1235_v61  ;;  %1688 = vmatprep.mubr.bf16.mxu0 %v1237_v62  ;;  %v2137_v61 = vcombine.low %v1267_v33, %v1275_v54  ;;  %v2120_v62 = vcombine.high %v1250_v44, %v1258_v46  ;;  %v2122_v0 = vcombine.high %v1251_v49, %v1259_v50  ;;  %v1252_v54 = vld [vmem:[%s2331_s22 + $0x30] sm:$0xff] }
 0x2f6   : > { %v813_v44 = vrot.slane %v2516_v6, %v780_v45 }
 0x2f8   : > { %v2524_v14 = vpop.f32.mrf.mxu1  ;;  %v2526_v16 = vpop.f32.mrf.mxu0 }
 0x2f9   : > { %v1085_v12 = vadd.f32 %v2524_v14, %v789_v3 }
 0x2fa   : > { %v1086_v17 = vpop.f32.mrf.mxu1  ;;  %v1127_v20 = vpop.f32.mrf.mxu0 }
 0x2fb   : > { %v1087_v21 = vadd.f32 %v1086_v17, %v793_v7  ;;  %v1128_v57 = vadd.f32 %v1127_v20, %v801_v8  ;;  %1631 = vmatpush1.bf16.xpose.msra.mxu1 %v2115_v10  ;;  %1671 = vmatpush1.bf16.xpose.msra.mxu0 %v2117_v56  ;;  %v1292_v7 = vld [vmem:[%s2331_s22 + $0x170] sm:$0x11]  ;;  %v809_v8 = vrot.slane %v2516_v6, %v776_v26  ;;  %v1285_v10 = vld [vmem:[%s2331_s22 + $0x138] sm:$0xff] }
 0x2fc   : > { %v1088_v23 = vpop.f32.mrf.mxu1  ;;  %v1129_v24 = vpop.f32.mrf.mxu0  ;;  %1706 = vmatprep.subr.bf16.mxu1 %v2152_v18  ;;  %1746 = vmatprep.subr.bf16.mxu0 %v2154_v19  ;;  %v1293_v56 = vld [vmem:[%s2331_s22 + $0x178] sm:$0x11]  ;;  %v2121_v18 = vcombine.low %v1251_v49, %v1259_v50  ;;  %v2156_v55 = vcombine.high %v1284_v5, %v1292_v7  ;;  %v1126_v19 = vadd.f32 %v2526_v16, %v797_v4 }
 0x2fd   : > { %v1223_v25 = vmax.f32 %v1087_v21, 0.0  ;;  %v1225_v29 = vmax.f32 %v1128_v57, 0.0  ;;  %v2158_v17 = vcombine.high %v1285_v10, %v1293_v56  ;;  %v1222_v21 = vmax.f32 %v1085_v12, 0.0  ;;  %v1269_v24 = vld [vmem:[%s2331_s22 + $0xb8] sm:$0xff] }
 0x2fe   : > { %v1089_v30 = vpop.f32.mrf.mxu1  ;;  %v1130_v31 = vpop.f32.mrf.mxu0  ;;  %v1224_v57 = vmax.f32 %v1126_v19, 0.0  ;;  %v2155_v14 = vcombine.low %v1284_v5, %v1292_v7  ;;  %v2157_v28 = vcombine.low %v1285_v10, %v1293_v56 }
 0x2ff   : > { %v1239_v38 = vpack.c.bf16 %v1223_v25, %v1223_v25  ;;  %v1241_v41 = vpack.c.bf16 %v1225_v29, %v1225_v29  ;;  %v1277_v25 = vld [vmem:[%s2331_s22 + $0xf8] sm:$0xff]  ;;  %v1238_v16 = vpack.c.bf16 %v1222_v21, %v1222_v21  ;;  %v2140_v30 = vcombine.high %v1268_v58, %v1276_v22 }
 0x300   : > { %v1240_v29 = vpack.c.bf16 %v1224_v57, %v1224_v57  ;;  %v2142_v32 = vcombine.high %v1269_v24, %v1277_v25 }
 0x302   : > { %1649 = vmatmul.mubr.bf16.vlgmr.msra.gmra.mxu1 %v1234_v35  ;;  %1689 = vmatmul.mubr.bf16.vlgmr.msra.gmra.mxu0 %v1236_v36  ;;  %v1253_v35 = vld [vmem:[%s2331_s22 + $0x38] sm:$0xff] }
 0x303   : > { %1707 = vmatpush1.bf16.xpose.msra.mxu1 %v2151_v34  ;;  %1728 = vmatprep.mubr.bf16.mxu1 %v1239_v38  ;;  %v1260_v34 = vld [vmem:[%s2331_s22 + $0x70] sm:$0xff]  ;;  %v1261_v36 = vld [vmem:[%s2331_s22 + $0x78] sm:$0xff]  ;;  %v2141_v38 = vcombine.low %v1269_v24, %v1277_v25 }
 0x304   : > { %1747 = vmatpush1.bf16.xpose.msra.mxu0 %v2153_v37  ;;  %1768 = vmatprep.mubr.bf16.mxu0 %v1241_v41  ;;  %v2532_v42 = vpop.f32.mrf.mxu1  ;;  %v2534_v43 = vpop.f32.mrf.mxu0  ;;  %v2139_v37 = vcombine.low %v1268_v58, %v1276_v22  ;;  %v805_v41 = vrot.slane %v2516_v6, %v772_v15  ;;  %v2123_v46 = vcombine.low %v1252_v54, %v1260_v34 }
 0x305   : > { %1708 = vmatprep.subr.bf16.mxu1 %v2136_v39  ;;  %1748 = vmatprep.subr.bf16.mxu0 %v2138_v40  ;;  %v2124_v39 = vcombine.high %v1252_v54, %v1260_v34  ;;  %v2126_v40 = vcombine.high %v1253_v35, %v1261_v36  ;;  %v1208_v49 = vadd.f32 %v2534_v43, %v813_v44 }
 0x306   : > { %v1168_v47 = vpop.f32.mrf.mxu1  ;;  %v1209_v48 = vpop.f32.mrf.mxu0 }
 0x307   : > { %v1169_v20 = vadd.f32 %v1168_v47, %v809_v8  ;;  %v1210_v26 = vadd.f32 %v1209_v48, %v817_v11  ;;  %v1167_v47 = vadd.f32 %v2532_v42, %v805_v41  ;;  %v2125_v48 = vcombine.low %v1253_v35, %v1261_v36 }
 0x308   : > { %v1170_v52 = vpop.f32.mrf.mxu1  ;;  %v1211_v59 = vpop.f32.mrf.mxu0 }
 0x309   : > { %v1227_v27 = vmax.f32 %v1169_v20, 0.0  ;;  %v1229_v23 = vmax.f32 %v1210_v26, 0.0  ;;  %v1226_v50 = vmax.f32 %v1167_v47, 0.0 }
 0x30a   : > { %v1171_v1 = vpop.f32.mrf.mxu1  ;;  %v1212_v2 = vpop.f32.mrf.mxu0 }
 0x30b   : > { %1709 = vmatpush1.bf16.xpose.msra.mxu1 %v2135_v51  ;;  %v1243_v31 = vpack.c.bf16 %v1227_v27, %v1227_v27  ;;  %v1245_v33 = vpack.c.bf16 %v1229_v23, %v1229_v23  ;;  %v1228_v51 = vmax.f32 %v1208_v49, 0.0  ;;  %v1242_v52 = vpack.c.bf16 %v1226_v50, %v1226_v50 }
 0x30c   : > { %1749 = vmatpush1.bf16.xpose.msra.mxu0 %v2137_v61  ;;  %1710 = vmatprep.subr.bf16.mxu1 %v2120_v62 }
 0x30d   : > { %1750 = vmatprep.subr.bf16.mxu0 %v2122_v0  ;;  %v1244_v59 = vpack.c.bf16 %v1228_v51, %v1228_v51 }
 0x313   : > { %1711 = vmatpush1.bf16.xpose.msra.mxu1 %v2119_v53  ;;  %v1534_v53 = vrot.slane %v2339_v9, 3 }
 0x314   : > { %1751 = vmatpush1.bf16.xpose.msra.mxu0 %v2121_v18  ;;  %1786 = vmatprep.subr.bf16.mxu1 %v2156_v55 }
 0x315   : > { %1826 = vmatprep.subr.bf16.mxu0 %v2158_v17 }
 0x31a   : > { %1729 = vmatmul.mubr.bf16.vlgmr.msra.gmra.mxu1 %v1238_v16 }
 0x31b   : > { %1769 = vmatmul.mubr.bf16.vlgmr.msra.gmra.mxu0 %v1240_v29  ;;  %1787 = vmatpush1.bf16.xpose.msra.mxu1 %v2155_v14 }
 0x31c   : > { %1808 = vmatprep.mubr.bf16.mxu1 %v1243_v31  ;;  %1827 = vmatpush1.bf16.xpose.msra.mxu0 %v2157_v28 }
 0x31d   : > { %1848 = vmatprep.mubr.bf16.mxu0 %v1245_v33  ;;  %1788 = vmatprep.subr.bf16.mxu1 %v2140_v30 }
 0x31e   : > { %1828 = vmatprep.subr.bf16.mxu0 %v2142_v32 }
 0x323   : > { %1789 = vmatpush1.bf16.xpose.msra.mxu1 %v2139_v37 }
 0x324   : > { %1829 = vmatpush1.bf16.xpose.msra.mxu0 %v2141_v38  ;;  %1790 = vmatprep.subr.bf16.mxu1 %v2124_v39 }
 0x325   : > { %1830 = vmatprep.subr.bf16.mxu0 %v2126_v40  ;;  %v2212_v40 = vld [vmem:[%s2313_s8] sm:$0x3f] }
 0x326   : > { %v1870_v41 = vcombine.high %v2212_v40, %v2212_v40 }
 0x32b   : > { %1791 = vmatpush1.bf16.xpose.msra.mxu1 %v2123_v46 }
 0x32c   : > { %1831 = vmatpush1.bf16.xpose.msra.mxu0 %v2125_v48 }
 0x332   : > { %1809 = vmatmul.mubr.bf16.vlgmr.msra.gmra.mxu1 %v1242_v52 }
 0x333   : > { %1849 = vmatmul.mubr.bf16.vlgmr.msra.gmra.mxu0 %v1244_v59 }
 0x3aa   : > { %v1570_v15 = vpop.f32.mrf.mxu1  ;;  %v1610_v61 = vpop.f32.mrf.mxu0 }
 0x3ab   : > { %v1571_v17 = vadd.f32 %v1570_v15, %v1534_v53 }
 0x3ac   : > { %v1572_v60 = vpop.f32.mrf.mxu1  ;;  %v1612_v62 = vpop.f32.mrf.mxu0 }
 0x3ad   : > { %v1611_v26 = vadd.f32 %v1610_v61, %v1571_v17 }
 0x3ae   : > { %v1573_v45 = vpop.f32.mrf.mxu1  ;;  %v1613_v6 = vpop.f32.mrf.mxu0 }
 0x3b0   : > { %v1574_v0 = vpop.f32.mrf.mxu1  ;;  %v1614_v1 = vpop.f32.mrf.mxu0 }
 0x3c2   : > { %v1650_v42 = vpop.f32.mrf.mxu1  ;;  %v1690_v2 = vpop.f32.mrf.mxu0 }
 0x3c3   : > { %v1651_v21 = vadd.f32 %v1650_v42, %v1611_v26 }
 0x3c4   : > { %v1652_v3 = vpop.f32.mrf.mxu1  ;;  %v1692_v43 = vpop.f32.mrf.mxu0 }
 0x3c5   : > { %v1691_v57 = vadd.f32 %v1690_v2, %v1651_v21 }
 0x3c6   : > { %v1653_v4 = vpop.f32.mrf.mxu1  ;;  %v1693_v5 = vpop.f32.mrf.mxu0 }
 0x3c8   : > { %v1654_v7 = vpop.f32.mrf.mxu1  ;;  %v1694_v8 = vpop.f32.mrf.mxu0 }
 0x3da   : > { %v1730_v10 = vpop.f32.mrf.mxu1 }
 0x3db   : > { %v1770_v56 = vpop.f32.mrf.mxu0  ;;  %v1731_v27 = vadd.f32 %v1730_v10, %v1691_v57 }
 0x3dc   : > { %v1732_v11 = vpop.f32.mrf.mxu1 }
 0x3dd   : > { %v1772_v12 = vpop.f32.mrf.mxu0  ;;  %v1771_v58 = vadd.f32 %v1770_v56, %v1731_v27 }
 0x3de   : > { %v1733_v18 = vpop.f32.mrf.mxu1 }
 0x3df   : > { %v1773_v55 = vpop.f32.mrf.mxu0 }
 0x3e0   : > { %v1734_v19 = vpop.f32.mrf.mxu1 }
 0x3e1   : > { %v1774_v20 = vpop.f32.mrf.mxu0 }
 0x3f2   : > { %v1810_v22 = vpop.f32.mrf.mxu1 }
 0x3f3   : > { %v1811_v23 = vadd.f32 %v1810_v22, %v1771_v58  ;;  %v1850_v14 = vpop.f32.mrf.mxu0 }
 0x3f4   : > { %v1812_v24 = vpop.f32.mrf.mxu1 }
 0x3f5   : > { %v1851_v25 = vadd.f32 %v1850_v14, %v1811_v23  ;;  %v1852_v16 = vpop.f32.mrf.mxu0 }
 0x3f6   : > { %v1813_v28 = vpop.f32.mrf.mxu1 }
 0x3f7   : > { %v1853_v29 = vpop.f32.mrf.mxu0  ;;  %v1856_v9 = vadd.f32 %v1851_v25, %v2386_v13  ;;  %v1877_v13 = vrot.slane %v1870_v41, %v2375_v63 }
 0x3f8   : > { %v1814_v30 = vpop.f32.mrf.mxu1 }
 0x3f9   : > { %v1854_v31 = vpop.f32.mrf.mxu0  ;;  %v1857_v32 = vsel %vm434_vm4, %v1856_v9, 0.0  ;;  %v1887_v44 = vcombine.high %v1877_v13, %v1877_v13  ;;  %v1884_v46 = vrot.slane %v1877_v13, %v2375_v63 }
 0x3fa   : > { %1858 = vadd.xlane.f32.xlu1 %v1857_v32 }
 0x3fb   : > { %v1894_v48 = vrot.slane %v1887_v44, %v2375_v63 }
 0x483   : > { %v1859_v33 = vpop.xlane.xlu1 %1858 }
 0x484   : > { %v1860_v54 = vmul.f32 0.023809524, %v1859_v33 }
 0x486   : > { %v1861_v34 = vsub.f32 %v1856_v9, %v1860_v54 }
 0x488   : > { %v1862_v35 = vmul.f32 %v1861_v34, %v1861_v34 }
 0x48a   : > { %v1863_v36 = vsel %vm434_vm4, %v1862_v35, 0.0 }
 0x48b   : > { %1864 = vadd.xlane.f32.xlu1 %v1863_v36 }
 0x514   : > { %v1865_v37 = vpop.xlane.xlu1 %1864 }
 0x515   : > { %v1866_v38 = vmul.f32 0.023809524, %v1865_v37 }
 0x517   : > { %v1867_v39 = vadd.f32 1e-05, %v1866_v38 }
 0x519   : > { %2210 = vrsqrt.f32 %v1867_v39 }
 0x526   : > { %v2211_v47 = vpop.eup %2210 }
 0x527   : > { %v1869_v49 = vmul.f32 %v2211_v47, %v1861_v34 }
 0x529   : > { %v1886_v50 = vmul.f32 %v1884_v46, %v1869_v49  ;;  %1901 = sbr.rel (%p2159_p5) target bundleno = 1801 (0x709), region = 56 }
 0x52b   : > { %v1896_v51 = vadd.f32 %v1894_v48, %v1886_v50 }
 0x52d   : > { %1897 = vst.msk [vmem:[#allocation2] sm:$0x1] %vm434_vm4, %v1896_v51 }
 0x52e   : > { %v1903_v4 = vld [vmem:[%s2606_s1] sm:$0xf]  ;;  %vm1939_vm8 = vcmask 0  }
 0x52f   : > { %v1927_v7 = vrot.slane %v1903_v4, 1  ;;  %v1930_v56 = vrot.slane %v1903_v4, 2  ;;  %v1936_v18 = vrot.slane %v1903_v4, 3 }
 0x534   : > { %v1902_v52 = vld [vmem:[#allocation2] sm:$0x1] }
 0x535   : > { %v1904_v59 = vsel %vm434_vm4, %v1902_v52, 0.0 }
 0x536   : > { %1905 = vadd.xlane.f32.xlu0 %v1904_v59 }
 0x5bf   : > { %v1906_v15 = vpop.xlane.xlu0 %1905 }
 0x5c0   : > { %v1907_v61 = vmul.f32 0.023809524, %v1906_v15 }
 0x5c2   : > { %v1908_v60 = vsub.f32 %v1902_v52, %v1907_v61 }
 0x5c4   : > { %v1909_v62 = vmul.f32 %v1908_v60, %v1908_v60  ;;  %v1915_v5 = vmul.f32 %v1908_v60, %v1903_v4 }
 0x5c6   : > { %v1910_v45 = vsel %vm434_vm4, %v1909_v62, 0.0 }
 0x5c7   : > { %1911 = vadd.xlane.f32.xlu0 %v1910_v45 }
 0x650   : > { %v1912_v63 = vpop.xlane.xlu0 %1911 }
 0x651   : > { %v1914_v6 = vmul.f32 0.024390243, %v1912_v63 }
 0x653   : > { %2213 = vrsqrt.f32 %v1914_v6  ;;  %vm1918_vm6 = vcmp.eq.f32.partialorder %v1914_v6, inf  ;;  %v1921_v42 = vand.u32 2147483648, %v1914_v6  ;;  %vm1920_vm7 = vcmp.eq.f32.partialorder %v1914_v6, 0.0 }
 0x660   : > { %v2214_v0 = vpop.eup %2213 }
 0x661   : > { %v1917_v1 = vmul.f32 %v2214_v0, %v1914_v6 }
 0x663   : > { %v1919_v2 = vsel %vm1918_vm6, %v1914_v6, %v1917_v1 }
 0x664   : > { %v1922_v3 = vsel %vm1920_vm7, %v1921_v42, %v1919_v2 }
 0x665   : > { %v1923_v43 = vadd.f32 1e-06, %v1922_v3 }
 0x667   : > { %2215 = vrcp.f32 %v1923_v43 }
 0x674   : > { %v2216_v8 = vpop.eup %2215 }
 0x675   : > { %v1925_v10 = vmul.f32 %v2216_v8, %v1915_v5 }
 0x677   : > { %v1929_v11 = vadd.f32 %v1927_v7, %v1925_v10 }
 0x679   : > { %v1932_v53 = vmul.f32 %v1930_v56, %v1929_v11 }
 0x67b   : > { %v1933_v12 = vsel %vm434_vm4, %v1932_v53, 0.0 }
 0x67c   : > { %1934 = vadd.xlane.f32.xlu1 %v1933_v12 }
 0x705   : > { %v1935_v55 = vpop.xlane.xlu1 %1934 }
 0x706   : > { %v1938_v19 = vadd.f32 %v1936_v18, %v1935_v55 }
 0x708   : > { %1940 = vst.msk [vmem:[#allocation3] sm:$0x1] %vm1939_vm8, %v1938_v19 }
 0x709 PF: > { %p2192_p6 = scmp.eq.s32.totalorder %s2304_s25, 1  ;;  %s2257_s29 = smov [#allocation3]  }
 0x70a   : > { %s1948_s30 = sshll.u32 %s2257_s29, 4  ;;  %s1949_s30 = int_to_ptr.vmem [resolvable:$true] %s1948_s30 }
 0x70b   : > { %s2217_s8 = scalar_lea.vmem %s1949_s30, 16  ;;  %s2223_s9 = scalar_lea.vmem %s1949_s30, 32 }
 0x70c   : > { %p2218_p7 = scmp.ne.s32.totalorder %s1949_s30, %s2217_s8  ;;  %p2224_p10 = scmp.lt.s32.totalorder %s1949_s30, %s1949_s30 }
 0x70d   : > { %p2225_p11 = scmp.lt.s32.totalorder %s2223_s9, %s2217_s8 }
 0x70e   : > { %p2219_p8 = pnand %p2218_p7, %p2192_p6 }
 0x70f   : > { %p2226_p12 = por %p2225_p11, %p2224_p10 }
 0x710   : > { %p2220_p9 = pneg %p2219_p8 }
 0x712   : > { %p2227_p13 = pnand %p2226_p12, %p2220_p9 }
 0x714   : > { %2230 = shalt.err (!%p2227_p13)
}
 0x715   : > { %2189 = dma.vmem_to_hbm [thread:$0]  (%p2192_p6), %s1949_s30, 16, %s2612_s7, [#allocation4]  }
 0x716   : > { %2246 = dma.done.wait (%p2192_p6), [#allocation4], 16  }
 0x717   : > { %2248 = vsyncadd (%p2192_p6), [#allocation4], 4294967280 }
 0x718 PF: > { %s18_s24 = sadd.s32 1, %s2251_s24  }
 0x719   : > { %p15_p0 = scmp.ge.s32.totalorder %s18_s24, 4  }
 0x71b   :  { %17 = sbr.rel (!%p15_p0) target bundleno = 1 (0x1), region = 95 }
 0x720   :  { %1961 = vsyncpa [#allocation4], 1 }
 0x721   :  { %1963 = vsyncpa [#allocation4 + $0x1], 1 }

</bundles_post_ra>
